<compile_context>
chip_gen: v6e
topology: v6e:2x2x1
jax: 0.10.0
libtpu: 0.0.40
codegen_flags: <defaults>
</compile_context>

<pallas_src>
import functools

import jax
import jax.numpy as jnp
from jax import lax
from jax.experimental import pallas as pl
from jax.experimental.pallas import tpu as pltpu

_EPS = 1e-5


def _vmem_limit_bytes():
    """Scoped-VMEM limit derived from the chip (fallback if query fails)."""
    try:
        cap = int(getattr(pltpu.get_tpu_info(), "vmem_capacity_bytes",
                          64 * 1024 * 1024))
    except Exception:  # pragma: no cover - conservative fallback
        cap = 64 * 1024 * 1024
    return max(32 * 1024 * 1024, min(100 * 1024 * 1024, (cap * 3) // 4))


# --------------------------------------------------------------------------
# pass 1: h = conv3x3(relu(x)) (im2col, 3 accumulating dots) + BN1 partials
# --------------------------------------------------------------------------
def _conv3x3_stats_kernel(W, padl, x_ref, w9_ref, h_ref, s1_ref,
                          xpad_ref, im2col_ref):
    # x_ref     : (1, Cin, H*W)   one image, channel-major, spatial in lanes
    # w9_ref    : (Chid, 9*Cin)   3x3 weights, (dy, dx, cin)-ordered columns
    # h_ref     : (1, Chid, H*W)  conv output (pre-BN)
    # s1_ref    : (1, Chid, 2)    per-image [sum(h), sum(h^2)]
    # xpad_ref  : (Cin, padl + H*W + padr) flat zero-padded ReLU'd image
    # im2col_ref: (3*Cin, H*W)    one dy-group of im2col taps
    Cin, HW = x_ref.shape[1], x_ref.shape[2]
    Chid = w9_ref.shape[0]
    padr = xpad_ref.shape[1] - padl - HW

    # Zero only the pad strips (tiny); the interior is fully overwritten
    # below.  Done every step so each TensorCore's private scratch is valid
    # regardless of how the batch axis is split across cores.
    xpad_ref[:, 0:padl] = jnp.zeros((Cin, padl), xpad_ref.dtype)
    xpad_ref[:, padl + HW:padl + HW + padr] = jnp.zeros((Cin, padr),
                                                        xpad_ref.dtype)

    # ReLU first (zero padding commutes with ReLU); padl is a multiple of 128
    # so this interior store and the center tap are lane-aligned.
    xpad_ref[:, padl:padl + HW] = jnp.maximum(x_ref[0], 0.0)

    # Horizontal (dx = +/-1) taps wrap across rows in the flat stride-W
    # layout; mask the wrapped lanes.  Vertical out-of-range lands in the
    # zeroed pad strips.
    col = lax.broadcasted_iota(jnp.int32, (1, HW), 1) % W
    ok_l = col >= 1            # dx = -1 valid
    ok_r = col < (W - 1)       # dx = +1 valid

    # im2col one dy-group at a time: taps are written straight into the VMEM
    # scratch (no concat copy) and the matmul accumulates over 3 dots of
    # K = 3*Cin, bounding live VMEM to a (3*Cin, HW) slab.
    h = None
    for g, dy in enumerate((-1, 0, 1)):
        for k, dx in enumerate((-1, 0, 1)):
            off = dy * W + dx
            tap = xpad_ref[:, padl + off: padl + off + HW]
            if dx == -1:
                tap = jnp.where(ok_l, tap, 0.0)
            elif dx == 1:
                tap = jnp.where(ok_r, tap, 0.0)
            im2col_ref[k * Cin:(k + 1) * Cin, :] = tap.astype(im2col_ref.dtype)
        w_g = w9_ref[:, g * 3 * Cin:(g + 1) * 3 * Cin]          # (Chid, 3*Cin)
        part = lax.dot_general(w_g, im2col_ref[...],
                               dimension_numbers=(((1,), (0,)), ((), ())),
                               preferred_element_type=jnp.float32)
        h = part if h is None else h + part                      # (Chid, HW)

    h_ref[0] = h.astype(h_ref.dtype)
    # BN1 partial statistics taken from the f32 matmul result (exact even if
    # h is stored in bf16).  Kept as (Chid, 2): tiny, and a lane-dense layout
    # would need a cross-lane relayout of the lane-reduced sums anyway.
    s1_ref[0] = jnp.concatenate(
        [jnp.sum(h, axis=1, keepdims=True),
         jnp.sum(h * h, axis=1, keepdims=True)], axis=1)         # (Chid, 2)


# --------------------------------------------------------------------------
# pass 2: BN1 (folded FMA) -> ReLU -> conv1x1 (matmul) + BN2 partial stats
# --------------------------------------------------------------------------
def _bn1_conv1x1_stats_kernel(h_ref, sc1_ref, sh1_ref, w1_ref, z_ref, s2_ref):
    # h_ref : (1, Chid, H*W); sc1/sh1: (Chid, 1); w1_ref: (Cin, Chid)
    # z_ref : (1, Cin, H*W);  s2_ref : (1, Cin, 2)
    # NOTE: contraction depth here is Chid; if Chid < 128 this pass is
    # VPU/HBM-bound rather than MXU-bound (expected for typical ResBlocks).
    hb = h_ref[0].astype(jnp.float32)
    rh = jnp.maximum(hb * sc1_ref[...] + sh1_ref[...], 0.0)      # (Chid, HW)
    z = lax.dot_general(w1_ref[...], rh.astype(w1_ref.dtype),
                        dimension_numbers=(((1,), (0,)), ((), ())),
                        preferred_element_type=jnp.float32)      # (Cin, HW)
    z_ref[0] = z.astype(z_ref.dtype)
    s2_ref[0] = jnp.concatenate(
        [jnp.sum(z, axis=1, keepdims=True),
         jnp.sum(z * z, axis=1, keepdims=True)], axis=1)         # (Cin, 2)


# --------------------------------------------------------------------------
# pass 3: BN2 (folded FMA) + residual add  (output aliased onto z)
# --------------------------------------------------------------------------
def _bn2_residual_kernel(x_ref, z_ref, sc2_ref, sh2_ref, o_ref):
    o_ref[0] = (x_ref[0]
                + z_ref[0].astype(jnp.float32) * sc2_ref[...] + sh2_ref[...])


# --------------------------------------------------------------------------
# wrapper
# --------------------------------------------------------------------------
def resblock_forward(x_nchw, params, *,
                     mxu_dtype=jnp.float32, interm_dtype=jnp.float32):
    """x_nchw: (N, Cin, H, W) float32; returns (N, Cin, H, W) float32.

    mxu_dtype   : dtype of MXU operands (im2col taps + weights); bf16 doubles
                  matmul throughput on v6e/v7x at ~1e-3 accuracy.
    interm_dtype: HBM dtype of the h / z intermediates (bf16 halves their
                  bandwidth).  Both default to f32 to keep 1e-4 accuracy.
    """
    w3, g1, b1, w1, g2, b2 = params
    N, Cin, H, W = x_nchw.shape
    HW = H * W
    Chid = w3.shape[-1]
    padl = pl.cdiv(W + 1, 128) * 128      # lane-aligned left pad (>= W+1)
    padr = padl

    # Free reshape only -- no transpose, no padded copy materialized in HBM.
    x2 = x_nchw.reshape(N, Cin, HW).astype(jnp.float32)
    # Tiny one-off weight reshapes into matmul form.
    w9 = jnp.transpose(w3.astype(jnp.float32).reshape(9 * Cin, Chid))
    w9 = w9.astype(mxu_dtype)                                    # (Chid, 9*Cin)
    w1m = jnp.transpose(w1.astype(jnp.float32)).astype(mxu_dtype)  # (Cin, Chid)

    cparams = pltpu.CompilerParams(
        dimension_semantics=("parallel",),        # megacore over the batch
        vmem_limit_bytes=_vmem_limit_bytes())

    def img(c):        # one-image (lane-dense) block of an (N, c, H*W) array
        return pl.BlockSpec((1, c, HW), lambda n: (n, 0, 0))

    def rep(shape):    # small replicated operand (weights / folded BN params)
        return pl.BlockSpec(shape, lambda n, _nd=len(shape): (0,) * _nd)

    # ---- pass 1 -----------------------------------------------------------
    h, s1 = pl.pallas_call(
        functools.partial(_conv3x3_stats_kernel, W, padl),
        grid=(N,),
        in_specs=[img(Cin), rep((Chid, 9 * Cin))],
        out_specs=(img(Chid), pl.BlockSpec((1, Chid, 2), lambda n: (n, 0, 0))),
        out_shape=(jax.ShapeDtypeStruct((N, Chid, HW), interm_dtype),
                   jax.ShapeDtypeStruct((N, Chid, 2), jnp.float32)),
        scratch_shapes=(pltpu.VMEM((Cin, padl + HW + padr), jnp.float32),
                        pltpu.VMEM((3 * Cin, HW), mxu_dtype)),
        compiler_params=cparams,
    )(x2, w9)

    def fold_bn(stats, gamma, beta):
        # Global training-mode BN over N,H,W: sum the per-image (sum, sumsq)
        # partials, then fold gamma/beta/mean/var into one scale+shift per
        # channel.  Single-pass variance in f32 is fine at unit-scale
        # activations (1e-4 here).
        tot = jnp.sum(stats, axis=0)                      # (C, 2)
        cnt = float(N * HW)
        mean = tot[:, 0] / cnt
        var = tot[:, 1] / cnt - mean * mean               # biased batch variance
        scale = gamma * lax.rsqrt(var + _EPS)
        shift = beta - mean * scale
        return scale[:, None], shift[:, None]             # (C, 1)

    sc1, sh1 = fold_bn(s1, g1, b1)

    # ---- pass 2 -----------------------------------------------------------
    z, s2 = pl.pallas_call(
        _bn1_conv1x1_stats_kernel,
        grid=(N,),
        in_specs=[img(Chid), rep((Chid, 1)), rep((Chid, 1)), rep((Cin, Chid))],
        out_specs=(img(Cin), pl.BlockSpec((1, Cin, 2), lambda n: (n, 0, 0))),
        out_shape=(jax.ShapeDtypeStruct((N, Cin, HW), interm_dtype),
                   jax.ShapeDtypeStruct((N, Cin, 2), jnp.float32)),
        compiler_params=cparams,
    )(h, sc1, sh1, w1m)

    sc2, sh2 = fold_bn(s2, g2, b2)

    # ---- pass 3: BN2 + residual, output aliased onto z --------------------
    alias = {1: 0} if interm_dtype == jnp.float32 else {}
    out = pl.pallas_call(
        _bn2_residual_kernel,
        grid=(N,),
        in_specs=[img(Cin), img(Cin), rep((Cin, 1)), rep((Cin, 1))],
        out_specs=img(Cin),
        out_shape=jax.ShapeDtypeStruct((N, Cin, HW), jnp.float32),
        input_output_aliases=alias,
        compiler_params=cparams,
    )(x2, z, sc2, sh2)

    return out.reshape(N, Cin, H, W)


# --------------------------------------------------------------------------
# pure-JAX reference (PyTorch semantics) + params
# --------------------------------------------------------------------------
def resblock_reference(x_nchw, params):
    w3, g1, b1, w1, g2, b2 = params
    x = jnp.transpose(x_nchw, (0, 2, 3, 1)).astype(jnp.float32)   # NHWC

    def bn(t, g, b):
        m = jnp.mean(t, axis=(0, 1, 2), keepdims=True)
        v = jnp.mean((t - m) ** 2, axis=(0, 1, 2), keepdims=True)
        return (t - m) * lax.rsqrt(v + _EPS) * g + b

    y = jnp.maximum(x, 0.0)
    h = lax.conv_general_dilated(y, w3, (1, 1), "SAME",
                                 dimension_numbers=("NHWC", "HWIO", "NHWC"))
    h = jnp.maximum(bn(h, g1, b1), 0.0)
    z = lax.conv_general_dilated(h, w1[None, None], (1, 1), "SAME",
                                 dimension_numbers=("NHWC", "HWIO", "NHWC"))
    z = bn(z, g2, b2)
    return jnp.transpose(x + z, (0, 3, 1, 2))


def init_params(key, in_channels, hidden_channels):
    k3, k1 = jax.random.split(key)
    # Conv weights (deterministic random, roughly kaiming-scaled); BN defaults
    # gamma=1, beta=0 exactly as nn.BatchNorm2d.__init__.
    w3 = jax.random.normal(k3, (3, 3, in_channels, hidden_channels),
                           jnp.float32) * (1.0 / (3.0 * jnp.sqrt(float(in_channels))))
    w1 = jax.random.normal(k1, (hidden_channels, in_channels),
                           jnp.float32) * (1.0 / jnp.sqrt(float(hidden_channels)))
    g1 = jnp.ones((hidden_channels,), jnp.float32)
    b1 = jnp.zeros((hidden_channels,), jnp.float32)
    g2 = jnp.ones((in_channels,), jnp.float32)
    b2 = jnp.zeros((in_channels,), jnp.float32)
    return (w3, g1, b1, w1, g2, b2)


if __name__ == "__main__":
    N, Cin, H, W = 2, 4, 16, 16
    Chid = 8

    key = jax.random.PRNGKey(0)
    kx, kp = jax.random.split(key)
    x = jax.random.normal(kx, (N, Cin, H, W), jnp.float32)
    params = init_params(kp, Cin, Chid)

    fwd = jax.jit(resblock_forward)
    out = jax.block_until_ready(fwd(x, params))
    ref = jax.block_until_ready(resblock_reference(x, params))

    assert out.shape == (N, Cin, H, W)
    err = float(jnp.max(jnp.abs(out - ref)))
    assert jnp.allclose(out, ref, atol=1e-4, rtol=1e-4), f"max abs diff {err}"
    print("KERNEL_OK")
</pallas_src>

<mosaic_0001>
module attributes {stable_mosaic.version = 11 : i64} {
  func.func @_conv3x3_stats_kernel(%arg0: i32, %arg1: memref<1x4x256xf32, #tpu.memory_space<vmem>>, %arg2: memref<8x36xf32, #tpu.memory_space<vmem>>, %arg3: memref<1x8x256xf32, #tpu.memory_space<vmem>>, %arg4: memref<1x8x2xf32, #tpu.memory_space<vmem>>, %arg5: memref<4x512xf32, #tpu.memory_space<vmem>>, %arg6: memref<12x256xf32, #tpu.memory_space<vmem>>) attributes {dimension_semantics = [#tpu.dimension_semantics<parallel>], iteration_bounds = array<i64: 2>, scalar_prefetch = 0 : i64, scratch_operands = 2 : i64, tpu.core_type = #tpu.core_type<tc>, window_params = [{transform_indices = @transform_0, window_bounds = array<i64: 1, 4, 256>}, {pipeline_mode = #tpu.pipeline_mode<synchronous>, transform_indices = @transform_1, window_bounds = array<i64: 8, 36>}, {transform_indices = @transform_2, window_bounds = array<i64: 1, 8, 256>}, {transform_indices = @transform_3, window_bounds = array<i64: 1, 8, 2>}]} {
    %cst = arith.constant 0.000000e+00 : f32
    %0 = vector.broadcast %cst : f32 to vector<4x128xf32>
    %c0 = arith.constant 0 : index
    %c0_0 = arith.constant 0 : index
    %1 = vector.load %arg5[%c0, %c0_0] : memref<4x512xf32, #tpu.memory_space<vmem>>, vector<4x128xf32>
    tpu.vector_store %arg5[%c0, %c0_0], %0 {strides = array<i32>} : memref<4x512xf32, #tpu.memory_space<vmem>>, vector<4x128xf32>,
    %cst_1 = arith.constant 0.000000e+00 : f32
    %2 = vector.broadcast %cst_1 : f32 to vector<4x128xf32>
    %c0_2 = arith.constant 0 : index
    %c384 = arith.constant 384 : index
    %3 = vector.load %arg5[%c0_2, %c384] : memref<4x512xf32, #tpu.memory_space<vmem>>, vector<4x128xf32>
    tpu.vector_store %arg5[%c0_2, %c384], %2 {strides = array<i32>} : memref<4x512xf32, #tpu.memory_space<vmem>>, vector<4x128xf32>,
    %c0_3 = arith.constant 0 : index
    %c0_4 = arith.constant 0 : index
    %c0_5 = arith.constant 0 : index
    %4 = vector.load %arg1[%c0_3, %c0_4, %c0_5] : memref<1x4x256xf32, #tpu.memory_space<vmem>>, vector<1x4x256xf32>
    %5 = vector.shape_cast %4 : vector<1x4x256xf32> to vector<4x256xf32>
    %cst_6 = arith.constant 0.000000e+00 : f32
    %6 = vector.broadcast %cst_6 : f32 to vector<4x256xf32>
    %7 = arith.maximumf %5, %6 : vector<4x256xf32>
    %c0_7 = arith.constant 0 : index
    %c128 = arith.constant 128 : index
    %8 = vector.load %arg5[%c0_7, %c128] : memref<4x512xf32, #tpu.memory_space<vmem>>, vector<4x256xf32>
    tpu.vector_store %arg5[%c0_7, %c128], %7 {strides = array<i32>} : memref<4x512xf32, #tpu.memory_space<vmem>>, vector<4x256xf32>,
    %9 = tpu.iota {dimensions = array<i32: 1>} : vector<1x256xi32>
    %c16_i32 = arith.constant 16 : i32
    %c0_i32 = arith.constant 0 : i32
    %10 = arith.cmpi eq, %c16_i32, %c0_i32 : i32
    %c1_i32 = arith.constant 1 : i32
    %11 = arith.select %10, %c1_i32, %c16_i32 : i32
    %12 = vector.broadcast %11 : i32 to vector<1x256xi32>
    %13 = arith.remsi %9, %12 : vector<1x256xi32>
    %c0_i32_8 = arith.constant 0 : i32
    %14 = vector.broadcast %c0_i32_8 : i32 to vector<1x256xi32>
    %15 = arith.cmpi ne, %13, %14 : vector<1x256xi32>
    %c0_i32_9 = arith.constant 0 : i32
    %16 = vector.broadcast %c0_i32_9 : i32 to vector<1x256xi32>
    %17 = arith.cmpi slt, %13, %16 : vector<1x256xi32>
    %c0_i32_10 = arith.constant 0 : i32
    %18 = arith.cmpi slt, %11, %c0_i32_10 : i32
    %19 = vector.broadcast %18 : i1 to vector<1x256xi1>
    %20 = vector.broadcast %19 : vector<1x256xi1> to vector<1x256xi1>
    %21 = arith.xori %17, %20 : vector<1x256xi1>
    %22 = arith.andi %21, %15 : vector<1x256xi1>
    %23 = vector.broadcast %11 : i32 to vector<1x256xi32>
    %24 = arith.addi %13, %23 : vector<1x256xi32>
    %25 = arith.select %22, %24, %13 : vector<1x256xi1>, vector<1x256xi32>
    %c1_i32_11 = arith.constant 1 : i32
    %26 = vector.broadcast %c1_i32_11 : i32 to vector<1x256xi32>
    %27 = arith.cmpi sge, %25, %26 : vector<1x256xi32>
    %c15_i32 = arith.constant 15 : i32
    %28 = vector.broadcast %c15_i32 : i32 to vector<1x256xi32>
    %29 = arith.cmpi slt, %25, %28 : vector<1x256xi32>
    %c0_12 = arith.constant 0 : index
    %c111 = arith.constant 111 : index
    %30 = vector.load %arg5[%c0_12, %c111] : memref<4x512xf32, #tpu.memory_space<vmem>>, vector<4x256xf32>
    %cst_13 = arith.constant 0.000000e+00 : f32
    %31 = vector.shape_cast %27 : vector<1x256xi1> to vector<1x256xi1>
    %32 = vector.broadcast %31 : vector<1x256xi1> to vector<4x256xi1>
    %33 = vector.broadcast %cst_13 : f32 to vector<4x256xf32>
    %34 = arith.select %32, %30, %33 : vector<4x256xi1>, vector<4x256xf32>
    %c0_14 = arith.constant 0 : index
    %c0_15 = arith.constant 0 : index
    %35 = vector.load %arg6[%c0_14, %c0_15] : memref<12x256xf32, #tpu.memory_space<vmem>>, vector<4x256xf32>
    tpu.vector_store %arg6[%c0_14, %c0_15], %34 {strides = array<i32>} : memref<12x256xf32, #tpu.memory_space<vmem>>, vector<4x256xf32>,
    %c0_16 = arith.constant 0 : index
    %c112 = arith.constant 112 : index
    %36 = vector.load %arg5[%c0_16, %c112] : memref<4x512xf32, #tpu.memory_space<vmem>>, vector<4x256xf32>
    %c4 = arith.constant 4 : index
    %c0_17 = arith.constant 0 : index
    %37 = vector.load %arg6[%c4, %c0_17] : memref<12x256xf32, #tpu.memory_space<vmem>>, vector<4x256xf32>
    tpu.vector_store %arg6[%c4, %c0_17], %36 {strides = array<i32>} : memref<12x256xf32, #tpu.memory_space<vmem>>, vector<4x256xf32>,
    %c0_18 = arith.constant 0 : index
    %c113 = arith.constant 113 : index
    %38 = vector.load %arg5[%c0_18, %c113] : memref<4x512xf32, #tpu.memory_space<vmem>>, vector<4x256xf32>
    %cst_19 = arith.constant 0.000000e+00 : f32
    %39 = vector.shape_cast %29 : vector<1x256xi1> to vector<1x256xi1>
    %40 = vector.broadcast %39 : vector<1x256xi1> to vector<4x256xi1>
    %41 = vector.broadcast %cst_19 : f32 to vector<4x256xf32>
    %42 = arith.select %40, %38, %41 : vector<4x256xi1>, vector<4x256xf32>
    %c8 = arith.constant 8 : index
    %c0_20 = arith.constant 0 : index
    %43 = vector.load %arg6[%c8, %c0_20] : memref<12x256xf32, #tpu.memory_space<vmem>>, vector<4x256xf32>
    tpu.vector_store %arg6[%c8, %c0_20], %42 {strides = array<i32>} : memref<12x256xf32, #tpu.memory_space<vmem>>, vector<4x256xf32>,
    %c0_21 = arith.constant 0 : index
    %c0_22 = arith.constant 0 : index
    %44 = vector.load %arg2[%c0_21, %c0_22] : memref<8x36xf32, #tpu.memory_space<vmem>>, vector<8x12xf32>
    %c0_23 = arith.constant 0 : index
    %c0_24 = arith.constant 0 : index
    %45 = vector.load %arg6[%c0_23, %c0_24] : memref<12x256xf32, #tpu.memory_space<vmem>>, vector<12x256xf32>
    %cst_25 = arith.constant dense<0.000000e+00> : vector<8x256xf32>
    %46 = tpu.matmul %44, %45, %cst_25 {dimension_numbers = #tpu.dot_dimension_numbers<[1], [0], [0], [1], [0, 0, 1, 1], [], []>} : vector<8x12xf32>, vector<12x256xf32>, vector<8x256xf32> -> vector<8x256xf32>
    %c0_26 = arith.constant 0 : index
    %c127 = arith.constant 127 : index
    %47 = vector.load %arg5[%c0_26, %c127] : memref<4x512xf32, #tpu.memory_space<vmem>>, vector<4x256xf32>
    %cst_27 = arith.constant 0.000000e+00 : f32
    %48 = vector.shape_cast %27 : vector<1x256xi1> to vector<1x256xi1>
    %49 = vector.broadcast %48 : vector<1x256xi1> to vector<4x256xi1>
    %50 = vector.broadcast %cst_27 : f32 to vector<4x256xf32>
    %51 = arith.select %49, %47, %50 : vector<4x256xi1>, vector<4x256xf32>
    %c0_28 = arith.constant 0 : index
    %c0_29 = arith.constant 0 : index
    %52 = vector.load %arg6[%c0_28, %c0_29] : memref<12x256xf32, #tpu.memory_space<vmem>>, vector<4x256xf32>
    tpu.vector_store %arg6[%c0_28, %c0_29], %51 {strides = array<i32>} : memref<12x256xf32, #tpu.memory_space<vmem>>, vector<4x256xf32>,
    %c0_30 = arith.constant 0 : index
    %c128_31 = arith.constant 128 : index
    %53 = vector.load %arg5[%c0_30, %c128_31] : memref<4x512xf32, #tpu.memory_space<vmem>>, vector<4x256xf32>
    %c4_32 = arith.constant 4 : index
    %c0_33 = arith.constant 0 : index
    %54 = vector.load %arg6[%c4_32, %c0_33] : memref<12x256xf32, #tpu.memory_space<vmem>>, vector<4x256xf32>
    tpu.vector_store %arg6[%c4_32, %c0_33], %53 {strides = array<i32>} : memref<12x256xf32, #tpu.memory_space<vmem>>, vector<4x256xf32>,
    %c0_34 = arith.constant 0 : index
    %c129 = arith.constant 129 : index
    %55 = vector.load %arg5[%c0_34, %c129] : memref<4x512xf32, #tpu.memory_space<vmem>>, vector<4x256xf32>
    %cst_35 = arith.constant 0.000000e+00 : f32
    %56 = vector.shape_cast %29 : vector<1x256xi1> to vector<1x256xi1>
    %57 = vector.broadcast %56 : vector<1x256xi1> to vector<4x256xi1>
    %58 = vector.broadcast %cst_35 : f32 to vector<4x256xf32>
    %59 = arith.select %57, %55, %58 : vector<4x256xi1>, vector<4x256xf32>
    %c8_36 = arith.constant 8 : index
    %c0_37 = arith.constant 0 : index
    %60 = vector.load %arg6[%c8_36, %c0_37] : memref<12x256xf32, #tpu.memory_space<vmem>>, vector<4x256xf32>
    tpu.vector_store %arg6[%c8_36, %c0_37], %59 {strides = array<i32>} : memref<12x256xf32, #tpu.memory_space<vmem>>, vector<4x256xf32>,
    %c0_38 = arith.constant 0 : index
    %c12 = arith.constant 12 : index
    %61 = vector.load %arg2[%c0_38, %c12] : memref<8x36xf32, #tpu.memory_space<vmem>>, vector<8x12xf32>
    %c0_39 = arith.constant 0 : index
    %c0_40 = arith.constant 0 : index
    %62 = vector.load %arg6[%c0_39, %c0_40] : memref<12x256xf32, #tpu.memory_space<vmem>>, vector<12x256xf32>
    %cst_41 = arith.constant dense<0.000000e+00> : vector<8x256xf32>
    %63 = tpu.matmul %61, %62, %cst_41 {dimension_numbers = #tpu.dot_dimension_numbers<[1], [0], [0], [1], [0, 0, 1, 1], [], []>} : vector<8x12xf32>, vector<12x256xf32>, vector<8x256xf32> -> vector<8x256xf32>
    %64 = arith.addf %46, %63 : vector<8x256xf32>
    %c0_42 = arith.constant 0 : index
    %c143 = arith.constant 143 : index
    %65 = vector.load %arg5[%c0_42, %c143] : memref<4x512xf32, #tpu.memory_space<vmem>>, vector<4x256xf32>
    %cst_43 = arith.constant 0.000000e+00 : f32
    %66 = vector.shape_cast %27 : vector<1x256xi1> to vector<1x256xi1>
    %67 = vector.broadcast %66 : vector<1x256xi1> to vector<4x256xi1>
    %68 = vector.broadcast %cst_43 : f32 to vector<4x256xf32>
    %69 = arith.select %67, %65, %68 : vector<4x256xi1>, vector<4x256xf32>
    %c0_44 = arith.constant 0 : index
    %c0_45 = arith.constant 0 : index
    %70 = vector.load %arg6[%c0_44, %c0_45] : memref<12x256xf32, #tpu.memory_space<vmem>>, vector<4x256xf32>
    tpu.vector_store %arg6[%c0_44, %c0_45], %69 {strides = array<i32>} : memref<12x256xf32, #tpu.memory_space<vmem>>, vector<4x256xf32>,
    %c0_46 = arith.constant 0 : index
    %c144 = arith.constant 144 : index
    %71 = vector.load %arg5[%c0_46, %c144] : memref<4x512xf32, #tpu.memory_space<vmem>>, vector<4x256xf32>
    %c4_47 = arith.constant 4 : index
    %c0_48 = arith.constant 0 : index
    %72 = vector.load %arg6[%c4_47, %c0_48] : memref<12x256xf32, #tpu.memory_space<vmem>>, vector<4x256xf32>
    tpu.vector_store %arg6[%c4_47, %c0_48], %71 {strides = array<i32>} : memref<12x256xf32, #tpu.memory_space<vmem>>, vector<4x256xf32>,
    %c0_49 = arith.constant 0 : index
    %c145 = arith.constant 145 : index
    %73 = vector.load %arg5[%c0_49, %c145] : memref<4x512xf32, #tpu.memory_space<vmem>>, vector<4x256xf32>
    %cst_50 = arith.constant 0.000000e+00 : f32
    %74 = vector.shape_cast %29 : vector<1x256xi1> to vector<1x256xi1>
    %75 = vector.broadcast %74 : vector<1x256xi1> to vector<4x256xi1>
    %76 = vector.broadcast %cst_50 : f32 to vector<4x256xf32>
    %77 = arith.select %75, %73, %76 : vector<4x256xi1>, vector<4x256xf32>
    %c8_51 = arith.constant 8 : index
    %c0_52 = arith.constant 0 : index
    %78 = vector.load %arg6[%c8_51, %c0_52] : memref<12x256xf32, #tpu.memory_space<vmem>>, vector<4x256xf32>
    tpu.vector_store %arg6[%c8_51, %c0_52], %77 {strides = array<i32>} : memref<12x256xf32, #tpu.memory_space<vmem>>, vector<4x256xf32>,
    %c0_53 = arith.constant 0 : index
    %c24 = arith.constant 24 : index
    %79 = vector.load %arg2[%c0_53, %c24] : memref<8x36xf32, #tpu.memory_space<vmem>>, vector<8x12xf32>
    %c0_54 = arith.constant 0 : index
    %c0_55 = arith.constant 0 : index
    %80 = vector.load %arg6[%c0_54, %c0_55] : memref<12x256xf32, #tpu.memory_space<vmem>>, vector<12x256xf32>
    %cst_56 = arith.constant dense<0.000000e+00> : vector<8x256xf32>
    %81 = tpu.matmul %79, %80, %cst_56 {dimension_numbers = #tpu.dot_dimension_numbers<[1], [0], [0], [1], [0, 0, 1, 1], [], []>} : vector<8x12xf32>, vector<12x256xf32>, vector<8x256xf32> -> vector<8x256xf32>
    %82 = arith.addf %64, %81 : vector<8x256xf32>
    %c0_57 = arith.constant 0 : index
    %c0_58 = arith.constant 0 : index
    %c0_59 = arith.constant 0 : index
    %83 = vector.load %arg3[%c0_57, %c0_58, %c0_59] : memref<1x8x256xf32, #tpu.memory_space<vmem>>, vector<1x8x256xf32>
    %84 = vector.shape_cast %83 : vector<1x8x256xf32> to vector<8x256xf32>
    %85 = vector.shape_cast %82 : vector<8x256xf32> to vector<1x8x256xf32>
    tpu.vector_store %arg3[%c0_57, %c0_58, %c0_59], %85 {strides = array<i32>} : memref<1x8x256xf32, #tpu.memory_space<vmem>>, vector<1x8x256xf32>,
    %cst_60 = arith.constant dense<0.000000e+00> : vector<8xf32>
    %86 = vector.multi_reduction <add>, %82, %cst_60 [1] : vector<8x256xf32> to vector<8xf32>
    %87 = vector.shape_cast %86 : vector<8xf32> to vector<8x1xf32>
    %88 = arith.mulf %82, %82 : vector<8x256xf32>
    %cst_61 = arith.constant dense<0.000000e+00> : vector<8xf32>
    %89 = vector.multi_reduction <add>, %88, %cst_61 [1] : vector<8x256xf32> to vector<8xf32>
    %90 = vector.shape_cast %89 : vector<8xf32> to vector<8x1xf32>
    %91 = tpu.concatenate %87, %90 in 1 : vector<8x1xf32>, vector<8x1xf32> -> vector<8x2xf32>
    %c0_62 = arith.constant 0 : index
    %c0_63 = arith.constant 0 : index
    %c0_64 = arith.constant 0 : index
    %92 = vector.load %arg4[%c0_62, %c0_63, %c0_64] : memref<1x8x2xf32, #tpu.memory_space<vmem>>, vector<1x8x2xf32>
    %93 = vector.shape_cast %92 : vector<1x8x2xf32> to vector<8x2xf32>
    %94 = vector.shape_cast %91 : vector<8x2xf32> to vector<1x8x2xf32>
    tpu.vector_store %arg4[%c0_62, %c0_63, %c0_64], %94 {strides = array<i32>} : memref<1x8x2xf32, #tpu.memory_space<vmem>>, vector<1x8x2xf32>,
    return
  }
  func.func @transform_0(%arg0: i32) -> (i32, i32, i32) {
    %c0_i32 = arith.constant 0 : i32
    %c0_i32_0 = arith.constant 0 : i32
    %c0_i32_1 = arith.constant 0 : i32
    return %arg0, %c0_i32, %c0_i32_0 : i32, i32, i32
  }
  func.func @transform_1(%arg0: i32) -> (i32, i32) {
    %c0_i32 = arith.constant 0 : i32
    %c0_i32_0 = arith.constant 0 : i32
    %c0_i32_1 = arith.constant 0 : i32
    return %c0_i32, %c0_i32_0 : i32, i32
  }
  func.func @transform_2(%arg0: i32) -> (i32, i32, i32) {
    %c0_i32 = arith.constant 0 : i32
    %c0_i32_0 = arith.constant 0 : i32
    %c0_i32_1 = arith.constant 0 : i32
    return %arg0, %c0_i32, %c0_i32_0 : i32, i32, i32
  }
  func.func @transform_3(%arg0: i32) -> (i32, i32, i32) {
    %c0_i32 = arith.constant 0 : i32
    %c0_i32_0 = arith.constant 0 : i32
    %c0_i32_1 = arith.constant 0 : i32
    return %arg0, %c0_i32, %c0_i32_0 : i32, i32, i32
  }
}

module attributes {stable_mosaic.version = 11 : i64} {
  func.func @_bn1_conv1x1_stats_kernel(%arg0: i32, %arg1: memref<1x8x256xf32, #tpu.memory_space<vmem>>, %arg2: memref<8x1xf32, #tpu.memory_space<vmem>>, %arg3: memref<8x1xf32, #tpu.memory_space<vmem>>, %arg4: memref<4x8xf32, #tpu.memory_space<vmem>>, %arg5: memref<1x4x256xf32, #tpu.memory_space<vmem>>, %arg6: memref<1x4x2xf32, #tpu.memory_space<vmem>>) attributes {dimension_semantics = [#tpu.dimension_semantics<parallel>], iteration_bounds = array<i64: 2>, scalar_prefetch = 0 : i64, scratch_operands = 0 : i64, tpu.core_type = #tpu.core_type<tc>, window_params = [{transform_indices = @transform_0, window_bounds = array<i64: 1, 8, 256>}, {pipeline_mode = #tpu.pipeline_mode<synchronous>, transform_indices = @transform_1, window_bounds = array<i64: 8, 1>}, {pipeline_mode = #tpu.pipeline_mode<synchronous>, transform_indices = @transform_2, window_bounds = array<i64: 8, 1>}, {pipeline_mode = #tpu.pipeline_mode<synchronous>, transform_indices = @transform_3, window_bounds = array<i64: 4, 8>}, {transform_indices = @transform_4, window_bounds = array<i64: 1, 4, 256>}, {transform_indices = @transform_5, window_bounds = array<i64: 1, 4, 2>}]} {
    %c0 = arith.constant 0 : index
    %c0_0 = arith.constant 0 : index
    %c0_1 = arith.constant 0 : index
    %0 = vector.load %arg1[%c0, %c0_0, %c0_1] : memref<1x8x256xf32, #tpu.memory_space<vmem>>, vector<1x8x256xf32>
    %1 = vector.shape_cast %0 : vector<1x8x256xf32> to vector<8x256xf32>
    %c0_2 = arith.constant 0 : index
    %c0_3 = arith.constant 0 : index
    %2 = vector.load %arg2[%c0_2, %c0_3] : memref<8x1xf32, #tpu.memory_space<vmem>>, vector<8x1xf32>
    %3 = vector.broadcast %2 : vector<8x1xf32> to vector<8x256xf32>
    %4 = arith.mulf %1, %3 : vector<8x256xf32>
    %c0_4 = arith.constant 0 : index
    %c0_5 = arith.constant 0 : index
    %5 = vector.load %arg3[%c0_4, %c0_5] : memref<8x1xf32, #tpu.memory_space<vmem>>, vector<8x1xf32>
    %6 = vector.broadcast %5 : vector<8x1xf32> to vector<8x256xf32>
    %7 = arith.addf %4, %6 : vector<8x256xf32>
    %cst = arith.constant 0.000000e+00 : f32
    %8 = vector.broadcast %cst : f32 to vector<8x256xf32>
    %9 = arith.maximumf %7, %8 : vector<8x256xf32>
    %c0_6 = arith.constant 0 : index
    %c0_7 = arith.constant 0 : index
    %10 = vector.load %arg4[%c0_6, %c0_7] : memref<4x8xf32, #tpu.memory_space<vmem>>, vector<4x8xf32>
    %cst_8 = arith.constant dense<0.000000e+00> : vector<4x256xf32>
    %11 = tpu.matmul %10, %9, %cst_8 {dimension_numbers = #tpu.dot_dimension_numbers<[1], [0], [0], [1], [0, 0, 1, 1], [], []>} : vector<4x8xf32>, vector<8x256xf32>, vector<4x256xf32> -> vector<4x256xf32>
    %c0_9 = arith.constant 0 : index
    %c0_10 = arith.constant 0 : index
    %c0_11 = arith.constant 0 : index
    %12 = vector.load %arg5[%c0_9, %c0_10, %c0_11] : memref<1x4x256xf32, #tpu.memory_space<vmem>>, vector<1x4x256xf32>
    %13 = vector.shape_cast %12 : vector<1x4x256xf32> to vector<4x256xf32>
    %14 = vector.shape_cast %11 : vector<4x256xf32> to vector<1x4x256xf32>
    tpu.vector_store %arg5[%c0_9, %c0_10, %c0_11], %14 {strides = array<i32>} : memref<1x4x256xf32, #tpu.memory_space<vmem>>, vector<1x4x256xf32>,
    %cst_12 = arith.constant dense<0.000000e+00> : vector<4xf32>
    %15 = vector.multi_reduction <add>, %11, %cst_12 [1] : vector<4x256xf32> to vector<4xf32>
    %16 = vector.shape_cast %15 : vector<4xf32> to vector<4x1xf32>
    %17 = arith.mulf %11, %11 : vector<4x256xf32>
    %cst_13 = arith.constant dense<0.000000e+00> : vector<4xf32>
    %18 = vector.multi_reduction <add>, %17, %cst_13 [1] : vector<4x256xf32> to vector<4xf32>
    %19 = vector.shape_cast %18 : vector<4xf32> to vector<4x1xf32>
    %20 = tpu.concatenate %16, %19 in 1 : vector<4x1xf32>, vector<4x1xf32> -> vector<4x2xf32>
    %c0_14 = arith.constant 0 : index
    %c0_15 = arith.constant 0 : index
    %c0_16 = arith.constant 0 : index
    %21 = vector.load %arg6[%c0_14, %c0_15, %c0_16] : memref<1x4x2xf32, #tpu.memory_space<vmem>>, vector<1x4x2xf32>
    %22 = vector.shape_cast %21 : vector<1x4x2xf32> to vector<4x2xf32>
    %23 = vector.shape_cast %20 : vector<4x2xf32> to vector<1x4x2xf32>
    tpu.vector_store %arg6[%c0_14, %c0_15, %c0_16], %23 {strides = array<i32>} : memref<1x4x2xf32, #tpu.memory_space<vmem>>, vector<1x4x2xf32>,
    return
  }
  func.func @transform_0(%arg0: i32) -> (i32, i32, i32) {
    %c0_i32 = arith.constant 0 : i32
    %c0_i32_0 = arith.constant 0 : i32
    %c0_i32_1 = arith.constant 0 : i32
    return %arg0, %c0_i32, %c0_i32_0 : i32, i32, i32
  }
  func.func @transform_1(%arg0: i32) -> (i32, i32) {
    %c0_i32 = arith.constant 0 : i32
    %c0_i32_0 = arith.constant 0 : i32
    %c0_i32_1 = arith.constant 0 : i32
    return %c0_i32, %c0_i32_0 : i32, i32
  }
  func.func @transform_2(%arg0: i32) -> (i32, i32) {
    %c0_i32 = arith.constant 0 : i32
    %c0_i32_0 = arith.constant 0 : i32
    %c0_i32_1 = arith.constant 0 : i32
    return %c0_i32, %c0_i32_0 : i32, i32
  }
  func.func @transform_3(%arg0: i32) -> (i32, i32) {
    %c0_i32 = arith.constant 0 : i32
    %c0_i32_0 = arith.constant 0 : i32
    %c0_i32_1 = arith.constant 0 : i32
    return %c0_i32, %c0_i32_0 : i32, i32
  }
  func.func @transform_4(%arg0: i32) -> (i32, i32, i32) {
    %c0_i32 = arith.constant 0 : i32
    %c0_i32_0 = arith.constant 0 : i32
    %c0_i32_1 = arith.constant 0 : i32
    return %arg0, %c0_i32, %c0_i32_0 : i32, i32, i32
  }
  func.func @transform_5(%arg0: i32) -> (i32, i32, i32) {
    %c0_i32 = arith.constant 0 : i32
    %c0_i32_0 = arith.constant 0 : i32
    %c0_i32_1 = arith.constant 0 : i32
    return %arg0, %c0_i32, %c0_i32_0 : i32, i32, i32
  }
}

module attributes {stable_mosaic.version = 11 : i64} {
  func.func @_bn2_residual_kernel(%arg0: i32, %arg1: memref<1x4x256xf32, #tpu.memory_space<vmem>>, %arg2: memref<1x4x256xf32, #tpu.memory_space<vmem>>, %arg3: memref<4x1xf32, #tpu.memory_space<vmem>>, %arg4: memref<4x1xf32, #tpu.memory_space<vmem>>, %arg5: memref<1x4x256xf32, #tpu.memory_space<vmem>>) attributes {dimension_semantics = [#tpu.dimension_semantics<parallel>], iteration_bounds = array<i64: 2>, scalar_prefetch = 0 : i64, scratch_operands = 0 : i64, tpu.core_type = #tpu.core_type<tc>, window_params = [{transform_indices = @transform_0, window_bounds = array<i64: 1, 4, 256>}, {transform_indices = @transform_1, window_bounds = array<i64: 1, 4, 256>}, {pipeline_mode = #tpu.pipeline_mode<synchronous>, transform_indices = @transform_2, window_bounds = array<i64: 4, 1>}, {pipeline_mode = #tpu.pipeline_mode<synchronous>, transform_indices = @transform_3, window_bounds = array<i64: 4, 1>}, {transform_indices = @transform_4, window_bounds = array<i64: 1, 4, 256>}]} {
    %c0 = arith.constant 0 : index
    %c0_0 = arith.constant 0 : index
    %c0_1 = arith.constant 0 : index
    %0 = vector.load %arg1[%c0, %c0_0, %c0_1] : memref<1x4x256xf32, #tpu.memory_space<vmem>>, vector<1x4x256xf32>
    %1 = vector.shape_cast %0 : vector<1x4x256xf32> to vector<4x256xf32>
    %c0_2 = arith.constant 0 : index
    %c0_3 = arith.constant 0 : index
    %c0_4 = arith.constant 0 : index
    %2 = vector.load %arg2[%c0_2, %c0_3, %c0_4] : memref<1x4x256xf32, #tpu.memory_space<vmem>>, vector<1x4x256xf32>
    %3 = vector.shape_cast %2 : vector<1x4x256xf32> to vector<4x256xf32>
    %c0_5 = arith.constant 0 : index
    %c0_6 = arith.constant 0 : index
    %4 = vector.load %arg3[%c0_5, %c0_6] : memref<4x1xf32, #tpu.memory_space<vmem>>, vector<4x1xf32>
    %5 = vector.broadcast %4 : vector<4x1xf32> to vector<4x256xf32>
    %6 = arith.mulf %3, %5 : vector<4x256xf32>
    %7 = arith.addf %1, %6 : vector<4x256xf32>
    %c0_7 = arith.constant 0 : index
    %c0_8 = arith.constant 0 : index
    %8 = vector.load %arg4[%c0_7, %c0_8] : memref<4x1xf32, #tpu.memory_space<vmem>>, vector<4x1xf32>
    %9 = vector.broadcast %8 : vector<4x1xf32> to vector<4x256xf32>
    %10 = arith.addf %7, %9 : vector<4x256xf32>
    %c0_9 = arith.constant 0 : index
    %c0_10 = arith.constant 0 : index
    %c0_11 = arith.constant 0 : index
    %11 = vector.load %arg5[%c0_9, %c0_10, %c0_11] : memref<1x4x256xf32, #tpu.memory_space<vmem>>, vector<1x4x256xf32>
    %12 = vector.shape_cast %11 : vector<1x4x256xf32> to vector<4x256xf32>
    %13 = vector.shape_cast %10 : vector<4x256xf32> to vector<1x4x256xf32>
    tpu.vector_store %arg5[%c0_9, %c0_10, %c0_11], %13 {strides = array<i32>} : memref<1x4x256xf32, #tpu.memory_space<vmem>>, vector<1x4x256xf32>,
    return
  }
  func.func @transform_0(%arg0: i32) -> (i32, i32, i32) {
    %c0_i32 = arith.constant 0 : i32
    %c0_i32_0 = arith.constant 0 : i32
    %c0_i32_1 = arith.constant 0 : i32
    return %arg0, %c0_i32, %c0_i32_0 : i32, i32, i32
  }
  func.func @transform_1(%arg0: i32) -> (i32, i32, i32) {
    %c0_i32 = arith.constant 0 : i32
    %c0_i32_0 = arith.constant 0 : i32
    %c0_i32_1 = arith.constant 0 : i32
    return %arg0, %c0_i32, %c0_i32_0 : i32, i32, i32
  }
  func.func @transform_2(%arg0: i32) -> (i32, i32) {
    %c0_i32 = arith.constant 0 : i32
    %c0_i32_0 = arith.constant 0 : i32
    %c0_i32_1 = arith.constant 0 : i32
    return %c0_i32, %c0_i32_0 : i32, i32
  }
  func.func @transform_3(%arg0: i32) -> (i32, i32) {
    %c0_i32 = arith.constant 0 : i32
    %c0_i32_0 = arith.constant 0 : i32
    %c0_i32_1 = arith.constant 0 : i32
    return %c0_i32, %c0_i32_0 : i32, i32
  }
  func.func @transform_4(%arg0: i32) -> (i32, i32, i32) {
    %c0_i32 = arith.constant 0 : i32
    %c0_i32_0 = arith.constant 0 : i32
    %c0_i32_1 = arith.constant 0 : i32
    return %arg0, %c0_i32, %c0_i32_0 : i32, i32, i32
  }
}

</mosaic_0001>

<bundles_post_ra>
// kernel: resblock_forward.4
= control target key start
LH: loop header
LB: loop body
LE: loop exit
PB: predicated region body
PF: predicated region fallthrough
CT: control target
= control target key end

     0   :  { %s506_s18 = smov 0   ;;  %s540_s0 = inlined_call_operand.vmem [shape: f32[2,8,256], index: 0, kind: input, shape index: {}]   ;;  %s541_s1 = inlined_call_operand.vmem [shape: f32[8,1], index: 1, kind: input, shape index: {}]   ;;  %s542_s2 = inlined_call_operand.vmem [shape: f32[8,1], index: 2, kind: input, shape index: {}]   ;;  %s543_s3 = inlined_call_operand.vmem [shape: f32[4,8], index: 3, kind: input, shape index: {}]   ;;  %s544_s4 = inlined_call_operand.vmem [shape: f32[2,4,256], index: 4, kind: output, shape index: {0}]   ;;  %s545_s5 = inlined_call_operand.vmem [shape: f32[2,4,2], index: 5, kind: output, shape index: {1}]  }
   0x1 LB: > { %s440_s19 = sadd.s32 4294967295, %s472_s18   ;;  %p444_p0 = scmp.ge.s32.totalorder %s472_s18, 1  ;;  %s472_s18 = sphi %s506_s18, %s16_s18  }
   0x2   : > { %p190_p1 = scmp.lt.s32.totalorder %s472_s18, 3 }
   0x4   : > { %p191_p2 = pnand %p444_p0, %p190_p1 }
   0x5   : > { %p222_p3 = scmp.lt.s32.totalorder (!%p191_p2), %s440_s19, 1 }
   0x6   : > { %194 = sbr.rel (%p191_p2) target bundleno = 489 (0x1e9), region = 36 }
   0xb   : > { %v238_v0 = vld [vmem:[%s541_s1] sm:$0xff]  ;;  %v474_v1 = vmov 0   ;;  %v475_v3 = vmov 0.0   ;;  %s547_s19 = smov (!%p222_p3, %s440_s19), 1  ;;  %vm257_vm0 = vcmask 64512   ;;  %vm337_vm1 = vcmask 1043456  }
   0xc   : > { %465 = vset.pattern.permute.xlu0 %v474_v1  ;;  %v246_v2 = vld [vmem:[%s542_s2] sm:$0xff]  ;;  %325 = vmatprep.mubr.f32.mxu0 %v475_v3  ;;  %s453_s24 = sshll.u32 %s547_s19, 4  ;;  %s454_s30 = sshll.u32 %s547_s19, 3  ;;  %vm350_vm2 = vcmask 7168   ;;  %vm352_vm3 = vcmask 11264  }
   0xd   : > { %241 = vperm.xlu0 %465, %v238_v0   ;;  %s226_s27 = scalar_lea.vmem %s540_s0, %s453_s24  ;;  %v256_v14 = vld [vmem:[%s543_s3] sm:$0xf]  ;;  %s231_s8 = scalar_lea.vmem %s544_s4, %s454_s30 }
   0xe   : > { %v236_v5 = vld [vmem:[%s226_s27] sm:$0xff]  ;;  %v237_v6 = vld [vmem:[%s226_s27 + $0x8] sm:$0xff]  ;;  %s449_s9 = sshll.u32 %s547_s19, 2 }
   0xf   : > { %s235_s12 = scalar_lea.vmem %s545_s5, %s449_s9 }
  0x11   : > { %249 = vperm.xlu0 %465, %v246_v2  }
  0x88   : > { %v242_v4 = vpop.permute.xlu0 %241 }
  0x89   : > { %v244_v7 = vmul.f32 %v242_v4, %v236_v5  ;;  %v245_v8 = vmul.f32 %v242_v4, %v237_v6 }
  0x8c   : > { %v250_v9 = vpop.permute.xlu0 %249 }
  0x8d   : > { %v252_v10 = vadd.f32 %v250_v9, %v244_v7  ;;  %v253_v11 = vadd.f32 %v250_v9, %v245_v8 }
  0x8f   : > { %v254_v12 = vmax.f32 %v252_v10, 0.0  ;;  %v255_v13 = vmax.f32 %v253_v11, 0.0 }
  0x91   : > { %291 = vmatprep.subr.mxu0 %v255_v13 }
  0x92   : > { %292 = vmatpush1.msra.mxu0 %v254_v12 }
  0x93   : > { %450 = vmatmul.mubr.msk.f32.vlgmr.msra.gmra.mxu0 %vm257_vm0, %v256_v14 }
 0x153   : > { %v327_v15 = vpop.f32.mrf.mxu0 }
 0x154   : > { %v343_v16 = vmul.f32 %v327_v15, %v327_v15  ;;  %v338_v20 = vsel %vm337_vm1, %v327_v15, 0.0 }
 0x155   : > { %v329_v17 = vpop.f32.mrf.mxu0 }
 0x156   : > { %v334_v18 = vcombine.low %v327_v15, %v329_v17  ;;  %v344_v19 = vmul.f32 %v329_v17, %v329_v17  ;;  %v339_v21 = vsel %vm337_vm1, %v329_v17, 0.0  ;;  %v345_v24 = vsel %vm337_vm1, %v343_v16, 0.0 }
 0x157   : > { %v340_v22 = vadd.f32 %v339_v21, %v338_v20 }
 0x158   : > { %336 = vst [vmem:[%s231_s8] sm:$0xff] %v334_v18  ;;  %v346_v23 = vsel %vm337_vm1, %v344_v19, 0.0 }
 0x159   : > { %341 = vadd.xlane.f32.xlu1 %v340_v22  ;;  %v347_v25 = vadd.f32 %v346_v23, %v345_v24 }
 0x15d   : > { %348 = vadd.xlane.f32.xlu1 %v347_v25 }
 0x1e2   : > { %v342_v26 = vpop.xlane.xlu1 %341 }
 0x1e6   : > { %v349_v27 = vpop.xlane.xlu1 %348 }
 0x1e7   : > { %v351_v28 = vsel %vm350_vm2, %v342_v26, %v349_v27 }
 0x1e8   : > { %353 = vst.msk [vmem:[%s235_s12] sm:$0xf] %vm352_vm3, %v351_v28 }
 0x1e9 PF: > { %s16_s18 = sadd.s32 1, %s472_s18  }
 0x1ea   : > { %p13_p4 = scmp.ge.s32.totalorder %s16_s18, 4  }
 0x1ec   :  { %15 = sbr.rel (!%p13_p4) target bundleno = 1 (0x1), region = 78 }

// kernel: resblock_forward.5
= control target key start
LH: loop header
LB: loop body
LE: loop exit
PB: predicated region body
PF: predicated region fallthrough
CT: control target
= control target key end

     0   :  { %s379_s15 = smov 0   ;;  %s405_s0 = inlined_call_operand.vmem [shape: f32[2,4,256], index: 0, kind: input, shape index: {}]   ;;  %s406_s1 = inlined_call_operand.vmem [shape: f32[2,4,256], index: 1, kind: input, shape index: {}, may-alias: {1,4}]   ;;  %s407_s2 = inlined_call_operand.vmem [shape: f32[4,1], index: 2, kind: input, shape index: {}]   ;;  %s408_s3 = inlined_call_operand.vmem [shape: f32[4,1], index: 3, kind: input, shape index: {}]   ;;  %s409_s4 = inlined_call_operand.vmem [shape: f32[2,4,256], index: 4, kind: output, shape index: {}, may-alias: {1,4}]  }
   0x1 LB: > { %s317_s16 = sadd.s32 4294967295, %s350_s15   ;;  %p321_p0 = scmp.ge.s32.totalorder %s350_s15, 1  ;;  %s350_s15 = sphi %s379_s15, %s14_s15  }
   0x2   : > { %p172_p1 = scmp.lt.s32.totalorder %s350_s15, 3 }
   0x4   : > { %p173_p2 = pnand %p321_p0, %p172_p1 }
   0x5   : > { %p203_p3 = scmp.lt.s32.totalorder (!%p173_p2), %s317_s16, 1 }
   0x6   : > { %176 = sbr.rel (%p173_p2) target bundleno = 146 (0x92), region = 36 }
   0xb   : > { %v220_v0 = vld [vmem:[%s407_s2] sm:$0xf]  ;;  %v352_v1 = vmov 0   ;;  %v353_v3 = vmov 839922192   ;;  %v228_v5 = vlaneseq  ;;  %s411_s16 = smov (!%p203_p3, %s317_s16), 1 }
   0xc   : > { %343 = vset.pattern.permute.xlu0 %v352_v1  ;;  %v235_v2 = vld [vmem:[%s408_s3] sm:$0xf]  ;;  %v226_v4 = vunpack.c.l.s4 %v353_v3  ;;  %s330_s21 = sshll.u32 %s411_s16, 3 }
   0xd   : > { %223 = vperm.xlu0 %343, %v220_v0   ;;  %v229_v7 = vshrl.u32 %v228_v5, 7  ;;  %s212_s24 = scalar_lea.vmem %s406_s1, %s330_s21  ;;  %s207_s27 = scalar_lea.vmem %s405_s0, %s330_s21 }
   0xe   : > { %v227_v6 = vunpack.c.0.s8 %v226_v4  ;;  %v219_v10 = vld [vmem:[%s212_s24] sm:$0xff]  ;;  %s217_s30 = scalar_lea.vmem %s409_s4, %s330_s21 }
   0xf   : > { %v218_v12 = vld [vmem:[%s207_s27] sm:$0xff] }
  0x10   : > { %v230_v8 = vsub.s32 %v227_v6, %v229_v7 }
  0x11   : > { %238 = vperm.xlu0 %343, %v235_v2  }
  0x88   : > { %v224_v9 = vpop.permute.xlu0 %223 }
  0x89   : > { %v231_v11 = vrot.slane %v224_v9, %v230_v8 }
  0x8b   : > { %v233_v13 = vmul.f32 %v231_v11, %v219_v10 }
  0x8c   : > { %v239_v14 = vpop.permute.xlu0 %238 }
  0x8d   : > { %v234_v15 = vadd.f32 %v233_v13, %v218_v12  ;;  %v246_v16 = vrot.slane %v239_v14, %v230_v8 }
  0x8f   : > { %v248_v17 = vadd.f32 %v246_v16, %v234_v15 }
  0x91   : > { %249 = vst [vmem:[%s217_s30] sm:$0xff] %v248_v17 }
  0x92 PF: > { %s14_s15 = sadd.s32 1, %s350_s15  }
  0x93   : > { %p11_p4 = scmp.ge.s32.totalorder %s14_s15, 4  }
  0x95   :  { %13 = sbr.rel (!%p11_p4) target bundleno = 1 (0x1), region = 69 }

// kernel: resblock_forward.3
= control target key start
LH: loop header
LB: loop body
LE: loop exit
PB: predicated region body
PF: predicated region fallthrough
CT: control target
= control target key end

     0   :  { %s837_s12 = smov 0   ;;  %s948_s0 = inlined_call_operand.vmem [shape: f32[2,4,256], index: 0, kind: input, shape index: {}]   ;;  %s949_s1 = inlined_call_operand.vmem [shape: f32[8,36], index: 1, kind: input, shape index: {}]   ;;  %s950_s2 = inlined_call_operand.vmem [shape: f32[2,8,256], index: 2, kind: output, shape index: {0}]   ;;  %s951_s3 = inlined_call_operand.vmem [shape: f32[2,8,2], index: 3, kind: output, shape index: {1}]  }
   0x1 LB: > { %s752_s13 = sadd.s32 4294967295, %s804_s12   ;;  %p756_p0 = scmp.ge.s32.totalorder %s804_s12, 1  ;;  %s804_s12 = sphi %s837_s12, %s14_s12  }
   0x2   : > { %p140_p1 = scmp.lt.s32.totalorder %s804_s12, 3 }
   0x4   : > { %p141_p2 = pnand %p756_p0, %p140_p1 }
   0x5   : > { %p168_p3 = scmp.lt.s32.totalorder (!%p141_p2), %s752_s13, 1  ;;  %s807_s18 = smov (!%p141_p2), 15  }
   0x6   : > { %144 = sbr.rel (%p141_p2) target bundleno = 536 (0x218), region = 28  ;;  %s808_s19 = smov (!%p141_p2), 17  }
   0x7   : > { %s809_s20 = smov (!%p141_p2), 16   ;;  %s810_s21 = smov (!%p141_p2), 127  }
   0x8   : > { %s811_s22 = smov (!%p141_p2), 1   ;;  %s812_s23 = smov (!%p141_p2), 111  }
   0x9   : > { %s813_s24 = smov (!%p141_p2), 113   ;;  %s814_s25 = smov (!%p141_p2), 112  }
   0xa   : > { %s815_s28 = smov (!%p141_p2), 116   ;;  %s816_s29 = smov (!%p141_p2), 104  }
   0xb   : > { %v806_v0 = vmov 0.0   ;;  %s961_s13 = smov (!%p168_p3, %s752_s13), 1  ;;  %v874_v16 = vld [vmem:[%s949_s1] sm:$0xff]  ;;  %v187_v17 = vlaneseq  ;;  %vm233_vm0 = vcmask 138240   ;;  %vm276_vm3 = vcmask 121856  }
   0xc   : > { %182 = vst [vmem:[#allocation2] sm:$0xf] %v806_v0  ;;  %183 = vst [vmem:[#allocation2 + $0xc] sm:$0xf] %v806_v0  ;;  %418 = vmatprep.mubr.f32.mxu0 %v806_v0  ;;  %498 = vmatprep.mubr.f32.mxu1 %v806_v0  ;;  %s773_s14 = sshll.u32 %s961_s13, 3  ;;  %vm254_vm4 = vcmask 130048  }
   0xd   : > { %s172_s17 = scalar_lea.vmem %s948_s0, %s773_s14  ;;  %v188_v18 = vand.u32 127, %v187_v17  ;;  %vm327_vm7 = vcmask 1039360   ;;  %vm347_vm8 = vcmask 1043456   ;;  %vm301_vm9 = vcmask 7168   ;;  %s774_s30 = sshll.u32 %s961_s13, 4 }
   0xe   : > { %v184_v1 = vld [vmem:[%s172_s17] sm:$0xff]  ;;  %vm344_vm10 = vcmask 97280   ;;  %vm555_vm11 = vcmask 908288   ;;  %vm516_vm12 = vcmask 924672   ;;  %vm537_vm13 = vcmask 916480   ;;  %s177_s6 = scalar_lea.vmem %s950_s2, %s774_s30  ;;  %s181_s9 = scalar_lea.vmem %s951_s3, %s773_s14 }
   0xf   : > { %v857_v2 = vmax.f32 %v184_v1, 0.0  ;;  %v189_v19 = vadd.s32 128, %v188_v18  ;;  %v194_v22 = vand.u32 15, %v188_v18  ;;  %vm664_vm14 = vcmask 15360  }
  0x11   : > { %186 = vst [vmem:[#allocation2 + $0x4] sm:$0xff] %v857_v2  ;;  %v320_v9 = vcombine.high %v857_v2, %v857_v2  ;;  %v867_v14 = vcombine.low %v857_v2, %v857_v2  ;;  %v201_v23 = vand.u32 15, %v189_v19  ;;  %vm878_vm1 = vcmp.ge.s32.totalorder %v194_v22, 1 }
  0x12   : > { %vm890_vm5 = vcmp.lt.s32.totalorder %v194_v22, 15 }
  0x13   : > { %v317_v10 = vld [vmem:[#allocation2 + $0xc] sm:$0xf]  ;;  %vm882_vm2 = vcmp.ge.s32.totalorder %v201_v23, 1  ;;  %vm894_vm6 = vcmp.lt.s32.totalorder %v201_v23, 15 }
  0x14   : > { %v545_v12 = vld [vmem:[#allocation2 + $0xc] sm:$0xf] }
  0x15   : > { %v506_v13 = vld [vmem:[#allocation2 + $0xc] sm:$0xf] }
  0x16   : > { %v797_v15 = vld [vmem:[#allocation2 + $0xc] ss:$0 sps:$4 sm:$0xff]  }
  0x18   : > { %v262_v3 = vld [vmem:[#allocation2 + $0x8] sm:$0xf]  ;;  %v261_v4 = vld [vmem:[#allocation2] sm:$0xff] }
  0x19   : > { %274 = vrot.lane.b32.xlu0 %v262_v3, %s807_s18  ;;  %270 = vrot.lane.b32.xlu1 %v261_v4, %s807_s18  ;;  %v219_v5 = vld [vmem:[#allocation2 + $0x8] sm:$0xf]  ;;  %v269_v6 = vcombine.high %v261_v4, %v261_v4  ;;  %v246_v8 = vcombine.low %v261_v4, %v261_v4 }
  0x1a   : > { %v796_v7 = vld [vmem:[#allocation2 + $0x8] ss:$0 sps:$4 sm:$0xff]  }
  0x1b   : > { %v291_v11 = vld [vmem:[#allocation2 + $0x8] sm:$0xf] }
  0x1d   : > { %231 = vrot.lane.b32.xlu0 %v219_v5, %s808_s19  ;;  %227 = vrot.lane.b32.xlu1 %v261_v4, %s808_s19 }
  0x21   : > { %250 = vrot.lane.b32.xlu0 %v261_v4, %s809_s20  ;;  %229 = vrot.lane.b32.xlu1 %v269_v6, %s808_s19 }
  0x25   : > { %272 = vrot.lane.b32.xlu0 %v269_v6, %s807_s18  ;;  %252 = vrot.lane.b32.xlu1 %v796_v7, %s809_s20 }
  0x29   : > { %248 = vrot.lane.b32.xlu0 %v246_v8, %s809_s20  ;;  %323 = vrot.lane.b32.xlu1 %v320_v9, %s810_s21 }
  0x2d   : > { %325 = vrot.lane.b32.xlu0 %v317_v10, %s810_s21  ;;  %321 = vrot.lane.b32.xlu1 %v857_v2, %s810_s21 }
  0x31   : > { %297 = vrot.lane.b32.xlu0 %v269_v6, %s811_s22  ;;  %299 = vrot.lane.b32.xlu1 %v291_v11, %s811_s22 }
  0x35   : > { %295 = vrot.lane.b32.xlu0 %v261_v4, %s811_s22  ;;  %551 = vrot.lane.b32.xlu1 %v320_v9, %s812_s23 }
  0x39   : > { %553 = vrot.lane.b32.xlu0 %v545_v12, %s812_s23  ;;  %549 = vrot.lane.b32.xlu1 %v857_v2, %s812_s23 }
  0x3d   : > { %512 = vrot.lane.b32.xlu0 %v320_v9, %s813_s24  ;;  %514 = vrot.lane.b32.xlu1 %v506_v13, %s813_s24 }
  0x41   : > { %510 = vrot.lane.b32.xlu0 %v857_v2, %s813_s24  ;;  %533 = vrot.lane.b32.xlu1 %v857_v2, %s814_s25 }
  0x45   : > { %535 = vrot.lane.b32.xlu0 %v797_v15, %s814_s25  ;;  %531 = vrot.lane.b32.xlu1 %v867_v14, %s814_s25 }
  0x49   : > { %342 = vrot.lane.b32.xlu0 %v874_v16, %s815_s28  ;;  %570 = vrot.lane.b32.xlu1 %v874_v16, %s816_s29 }
  0x8b   : > { %v275_v20 = vpop.permute.xlu0 %274  ;;  %v271_v21 = vpop.permute.xlu1 %270 }
  0x8f   : > { %v232_v24 = vpop.permute.xlu0 %231  ;;  %v228_v25 = vpop.permute.xlu1 %227 }
  0x93   : > { %v251_v28 = vpop.permute.xlu0 %250  ;;  %v230_v29 = vpop.permute.xlu1 %229 }
  0x94   : > { %v234_v30 = vsel %vm233_vm0, %v228_v25, %v230_v29  ;;  %v235_v31 = vsel %vm233_vm0, %v230_v29, %v232_v24 }
  0x95   : > { %v238_v32 = vsel %vm878_vm1, %v234_v30, 0.0  ;;  %v239_v33 = vsel %vm882_vm2, %v235_v31, 0.0 }
  0x96   : > { %240 = vst [vmem:[#allocation3 + $0x10] sm:$0xf] %v238_v32  ;;  %241 = vst [vmem:[#allocation3] sm:$0xf] %v239_v33 }
  0x97   : > { %v273_v36 = vpop.permute.xlu0 %272  ;;  %v253_v37 = vpop.permute.xlu1 %252 }
  0x98   : > { %v277_v38 = vsel %vm276_vm3, %v271_v21, %v273_v36  ;;  %v278_v39 = vsel %vm276_vm3, %v273_v36, %v275_v20  ;;  %v256_v40 = vsel %vm254_vm4, %v251_v28, %v253_v37 }
  0x99   : > { %v281_v41 = vsel %vm890_vm5, %v277_v38, 0.0  ;;  %v282_v42 = vsel %vm894_vm6, %v278_v39, 0.0  ;;  %260 = vst [vmem:[#allocation3] sm:$0xf0] %v256_v40 }
  0x9a   : > { %283 = vst [vmem:[#allocation3 + $0x18] sm:$0xf] %v281_v41  ;;  %284 = vst [vmem:[#allocation3 + $0x8] sm:$0xf] %v282_v42 }
  0x9b   : > { %v249_v43 = vpop.permute.xlu0 %248  ;;  %v324_v44 = vpop.permute.xlu1 %323 }
  0x9c   : > { %v255_v45 = vsel %vm254_vm4, %v249_v43, %v251_v28 }
  0x9d   : > { %259 = vst [vmem:[#allocation3 + $0x10] sm:$0xf0] %v255_v45 }
  0x9f   : > { %v326_v46 = vpop.permute.xlu0 %325  ;;  %v322_v47 = vpop.permute.xlu1 %321 }
  0xa0   : > { %v287_v48 = vld [vmem:[#allocation3] sm:$0xff]  ;;  %v329_v49 = vsel %vm327_vm7, %v324_v44, %v326_v46  ;;  %v328_v50 = vsel %vm327_vm7, %v322_v47, %v324_v44 }
  0xa1   : > { %315 = vst [vmem:[#allocation3] sm:$0xf0] %v857_v2  ;;  %v333_v51 = vsel %vm894_vm6, %v329_v49, 0.0  ;;  %v332_v52 = vsel %vm890_vm5, %v328_v50, 0.0  ;;  %v289_v53 = vld [vmem:[#allocation3 + $0x8] sm:$0xf] }
  0xa2   : > { %v288_v54 = vld [vmem:[#allocation3 + $0x18] sm:$0xf]  ;;  %335 = vst [vmem:[#allocation3 + $0x8] sm:$0xf] %v333_v51  ;;  %765 = vmatprep.subr.msk.mxu1 %vm347_vm8, %v289_v53 }
  0xa3   : > { %334 = vst [vmem:[#allocation3 + $0x18] sm:$0xf] %v332_v52  ;;  %766 = vmatpush1.msk.msra.mxu1 %vm347_vm8, %v288_v54  ;;  %v298_v55 = vpop.permute.xlu0 %297  ;;  %v300_v56 = vpop.permute.xlu1 %299 }
  0xa4   : > { %v286_v57 = vld [vmem:[#allocation3 + $0x10] sm:$0xff]  ;;  %v303_v58 = vsel %vm301_vm9, %v298_v55, %v300_v56  ;;  %464 = vmatprep.subr.mxu1 %v287_v48 }
  0xa5   : > { %314 = vst [vmem:[#allocation3 + $0x10] sm:$0xf0] %v867_v14  ;;  %v307_v59 = vsel %vm882_vm2, %v303_v58, 0.0  ;;  %465 = vmatpush1.msra.mxu1 %v286_v57 }
  0xa6   : > { %309 = vst [vmem:[#allocation3] sm:$0xf] %v307_v59  ;;  %767 = vmatmul.mubr.msk.f32.vlgmr.msra.gmra.mxu1 %vm344_vm10, %v874_v16 }
  0xa7   : > { %v296_v60 = vpop.permute.xlu0 %295  ;;  %v552_v61 = vpop.permute.xlu1 %551 }
  0xa8   : > { %v302_v62 = vsel %vm301_vm9, %v296_v60, %v298_v55 }
  0xa9   : > { %v306_v63 = vsel %vm878_vm1, %v302_v62, 0.0  ;;  %v340_v1 = vld [vmem:[#allocation3 + $0x8] sm:$0xf] }
  0xaa   : > { %v339_v2 = vld [vmem:[#allocation3 + $0x18] sm:$0xf]  ;;  %308 = vst [vmem:[#allocation3 + $0x10] sm:$0xf] %v306_v63  ;;  %762 = vmatprep.subr.msk.mxu0 %vm347_vm8, %v340_v1 }
  0xab   : > { %v554_v3 = vpop.permute.xlu0 %553  ;;  %763 = vmatpush1.msk.msra.mxu0 %vm347_vm8, %v339_v2  ;;  %v550_v4 = vpop.permute.xlu1 %549 }
  0xac   : > { %v557_v5 = vsel %vm555_vm11, %v552_v61, %v554_v3  ;;  %v556_v6 = vsel %vm555_vm11, %v550_v4, %v552_v61 }
  0xad   : > { %v561_v7 = vsel %vm894_vm6, %v557_v5, 0.0  ;;  %v560_v8 = vsel %vm890_vm5, %v556_v6, 0.0  ;;  %v338_v9 = vld [vmem:[#allocation3] sm:$0xff] }
  0xae   : > { %563 = vst [vmem:[#allocation3 + $0x8] sm:$0xf] %v561_v7  ;;  %562 = vst [vmem:[#allocation3 + $0x18] sm:$0xf] %v560_v8  ;;  %384 = vmatprep.subr.mxu0 %v338_v9 }
  0xaf   : > { %v513_v10 = vpop.permute.xlu0 %512  ;;  %v515_v11 = vpop.permute.xlu1 %514 }
  0xb0   : > { %v518_v12 = vsel %vm516_vm12, %v513_v10, %v515_v11 }
  0xb1   : > { %v522_v13 = vsel %vm882_vm2, %v518_v12, 0.0  ;;  %v337_v14 = vld [vmem:[#allocation3 + $0x10] sm:$0xff] }
  0xb2   : > { %524 = vst [vmem:[#allocation3] sm:$0xf] %v522_v13  ;;  %385 = vmatpush1.msra.mxu0 %v337_v14 }
  0xb3   : > { %v511_v15 = vpop.permute.xlu0 %510  ;;  %v534_v16 = vpop.permute.xlu1 %533 }
  0xb4   : > { %v517_v17 = vsel %vm516_vm12, %v511_v15, %v513_v10 }
  0xb5   : > { %v521_v18 = vsel %vm878_vm1, %v517_v17, 0.0  ;;  %v568_v19 = vld [vmem:[#allocation3 + $0x8] sm:$0xf]  ;;  %v567_v25 = vld [vmem:[#allocation3 + $0x18] sm:$0xf] }
  0xb6   : > { %523 = vst [vmem:[#allocation3 + $0x10] sm:$0xf] %v521_v18  ;;  %768 = vmatprep.subr.msk.mxu0 %vm347_vm8, %v568_v19 }
  0xb7   : > { %v536_v20 = vpop.permute.xlu0 %535  ;;  %v532_v21 = vpop.permute.xlu1 %531 }
  0xb8   : > { %v539_v22 = vsel %vm537_vm13, %v534_v16, %v536_v20  ;;  %v538_v23 = vsel %vm537_vm13, %v532_v21, %v534_v16 }
  0xb9   : > { %543 = vst [vmem:[#allocation3] sm:$0xf0] %v539_v22  ;;  %542 = vst [vmem:[#allocation3 + $0x10] sm:$0xf0] %v538_v23 }
  0xbb   : > { %v343_v24 = vpop.permute.xlu0 %342  ;;  %v571_v28 = vpop.permute.xlu1 %570 }
  0xbc   : > { %764 = vmatmul.mubr.msk.f32.vlgmr.msra.gmra.mxu0 %vm344_vm10, %v343_v24 }
  0xbd   : > { %769 = vmatpush1.msk.msra.mxu0 %vm347_vm8, %v567_v25  ;;  %644 = vmatprep.mubr.f32.mxu0 %v806_v0 }
  0xc0   : > { %v566_v26 = vld [vmem:[#allocation3] sm:$0xff]  ;;  %v565_v27 = vld [vmem:[#allocation3 + $0x10] sm:$0xff] }
  0xc1   : > { %610 = vmatprep.subr.mxu0 %v566_v26 }
  0xc2   : > { %611 = vmatpush1.msra.mxu0 %v565_v27 }
  0xc3   : > { %770 = vmatmul.mubr.msk.f32.vlgmr.msra.gmra.mxu0 %vm344_vm10, %v571_v28 }
 0x166   : > { %v500_v30 = vpop.f32.mrf.mxu1 }
 0x168   : > { %v502_v32 = vpop.f32.mrf.mxu1 }
 0x17c   : > { %v420_v29 = vpop.f32.mrf.mxu0 }
 0x17d   : > { %v501_v33 = vadd.f32 %v500_v30, %v420_v29 }
 0x17e   : > { %v422_v31 = vpop.f32.mrf.mxu0 }
 0x17f   : > { %v503_v0 = vadd.f32 %v502_v32, %v422_v31 }
 0x183   : > { %v646_v34 = vpop.f32.mrf.mxu0 }
 0x184   : > { %v651_v35 = vadd.f32 %v646_v34, %v501_v33 }
 0x185   : > { %v648_v36 = vpop.f32.mrf.mxu0 }
 0x186   : > { %653 = vst [vmem:[%s177_s6] sm:$0xff] %v651_v35  ;;  %v652_v37 = vadd.f32 %v648_v36, %v503_v0  ;;  %v658_v39 = vmul.f32 %v651_v35, %v651_v35 }
 0x188   : > { %654 = vst [vmem:[%s177_s6 + $0x8] sm:$0xff] %v652_v37  ;;  %v655_v38 = vadd.f32 %v652_v37, %v651_v35  ;;  %v659_v40 = vmul.f32 %v652_v37, %v652_v37 }
 0x18a   : > { %656 = vadd.xlane.f32.xlu0 %v655_v38  ;;  %v660_v41 = vadd.f32 %v659_v40, %v658_v39 }
 0x18c   : > { %661 = vadd.xlane.f32.xlu1 %v660_v41 }
 0x213   : > { %v657_v42 = vpop.xlane.xlu0 %656 }
 0x215   : > { %v662_v43 = vpop.xlane.xlu1 %661 }
 0x216   : > { %v663_v44 = vsel %vm301_vm9, %v657_v42, %v662_v43 }
 0x217   : > { %665 = vst.msk [vmem:[%s181_s9] sm:$0xff] %vm664_vm14, %v663_v44 }
 0x218 PF: > { %s14_s12 = sadd.s32 1, %s804_s12  }
 0x219   : > { %p11_p4 = scmp.ge.s32.totalorder %s14_s12, 4  }
 0x21b   :  { %13 = sbr.rel (!%p11_p4) target bundleno = 1 (0x1), region = 70 }

</bundles_post_ra>
